<compile_context>
chip_gen: v7x
topology: tpu7x:2x2x1
jax: 0.10.0
libtpu: 0.0.40
codegen_flags: <defaults>
</compile_context>

<pallas_src>
import functools
import math

import jax
import jax.numpy as jnp
from jax.experimental import pallas as pl
from jax.experimental.pallas import tpu as pltpu

_LANE = 128
_SUBLANE = 8
_MIN_SPLIT_BYTES = 512 * 1024   # only force extra grid steps if blocks stay this big
_MAX_ROW_BLOCK = 512            # rows per block when the flattened batch is huge


# ---------------------------------------------------------------------------
# Kernels
# ---------------------------------------------------------------------------

def _apply_gate_kernel(q_ref, g_ref, o_ref):
    """o = q * g on one (tR, tW) block.

    q_ref/o_ref stream through HBM (double-buffered by the BlockSpec pipeline);
    g_ref has a constant index along the width axis so it stays VMEM-resident.
    Compute in f32 (free VPU filler under the DMA bound; v5e has no bf16 VALU),
    cast on store.
    """
    q = q_ref[...].astype(jnp.float32)
    g = g_ref[...].astype(jnp.float32)
    o_ref[...] = (q * g).astype(o_ref.dtype)


def _gate_only_kernel(c_ref, w_ref, b_ref, g_ref):
    """g = sigmoid(c @ w + b) for one (tB, H_in) row block (MXU + EUP)."""
    logits = jnp.dot(c_ref[...], w_ref[...], preferred_element_type=jnp.float32)
    g_ref[...] = jax.nn.sigmoid(logits + b_ref[...].astype(jnp.float32))


# ---------------------------------------------------------------------------
# Tiling / VMEM policy helpers (static Python on shapes only)
# ---------------------------------------------------------------------------

def _tile_bytes(rows, lanes, itemsize):
    """Padded VMEM bytes of a (rows, lanes) block under the (8,128) layout
    (sub-32-bit dtypes pack extra rows into the sublanes of each 4 KiB tile)."""
    rows_per_tile = _SUBLANE * max(1, 4 // itemsize)
    n_tiles = pl.cdiv(rows, rows_per_tile) * pl.cdiv(lanes, _LANE)
    return n_tiles * rows_per_tile * _LANE * itemsize


def _streaming_footprint(tR, tW, itemsize):
    # 2x q block + 2x out block + 2x gate block (gate stored in q.dtype).
    return 2 * 3 * _tile_bytes(tR, tW, itemsize)


def _vmem_policy():
    """Per-generation (footprint budget, scoped vmem_limit_bytes)."""
    budget, limit = 24 << 20, 40 << 20          # v5e/v6e: 128 MiB physical VMEM
    try:
        cap = getattr(pltpu.get_tpu_info(), "vmem_capacity_bytes", None)
        if cap is not None and cap <= (80 << 20):
            # v7x-class: 64 MiB per TensorCore, ~3.2 TB/s HBM -> slightly bigger
            # blocks, but keep the total scoped request well under 48 MiB.
            budget, limit = 28 << 20, 44 << 20
    except Exception:
        pass                                     # unknown chip: safe defaults
    return budget, limit


def _choose_row_repeat(B, T):
    """k | T minimizing the 8-row sublane padding of B*k rows; ties -> smallest k
    (keeps the lane axis as wide as possible)."""
    best_k, best_waste = 1, float("inf")
    for k in range(1, T + 1):
        if T % k:
            continue
        rows = B * k
        waste = (pl.cdiv(rows, _SUBLANE) * _SUBLANE) / rows
        if waste < best_waste - 1e-9:
            best_k, best_waste = k, waste
        if best_waste <= 1.0 + 1e-9:
            break                                # perfectly dense, smallest such k
    return best_k


def _choose_width_tile(row_width, H_out, tR, itemsize, budget):
    """Largest lane-dense width tile (multiple of lcm(H_out,128), or the full
    row) whose double-buffered q/out/gate footprint fits the budget; prefers
    >=2 (ideally >=4) grid steps when blocks stay large, so both v7x TensorCores
    get work along the 'parallel' axis."""
    L = (H_out * _LANE) // math.gcd(H_out, _LANE)          # lcm(H_out, 128)
    cands = sorted({row_width, *(j * L for j in range(1, row_width // L + 1))})
    fits = [w for w in cands if _streaming_footprint(tR, w, itemsize) <= budget]
    if not fits:
        # TODO(synk): pathological case (huge row block or huge lcm(H_out,128));
        # fall back to the smallest candidate and rely on the explicit vmem limit.
        return cands[0]
    best = max(fits)
    if pl.cdiv(row_width, best) < 2:
        for min_steps in (4, 2):
            split = [w for w in fits
                     if w % _LANE == 0
                     and pl.cdiv(row_width, w) >= min_steps
                     and _tile_bytes(tR, w, itemsize) >= _MIN_SPLIT_BYTES]
            if split:
                best = max(split)
                break
    return best


# ---------------------------------------------------------------------------
# pallas_call wrappers
# ---------------------------------------------------------------------------

def _apply_gate(q2, g_tiled, tR, tW, vmem_limit):
    """Pipelined broadcast-multiply over (row blocks) x (lane-dense width blocks)."""
    R, W = q2.shape
    nR, nT = pl.cdiv(R, tR), pl.cdiv(W, tW)
    if nR == 1:
        grid = (nT,)
        q_map, g_map = (lambda t: (0, t)), (lambda t: (0, 0))
        sem = ("parallel",)
    else:
        grid = (nR, nT)
        q_map, g_map = (lambda r, t: (r, t)), (lambda r, t: (r, 0))
        sem = ("parallel", "parallel")
    return pl.pallas_call(
        _apply_gate_kernel,
        out_shape=jax.ShapeDtypeStruct((R, W), q2.dtype),
        grid=grid,
        in_specs=[
            pl.BlockSpec((tR, tW), q_map),   # streamed q (double-buffered)
            pl.BlockSpec((tR, tW), g_map),   # gate: constant along width -> resident
        ],
        out_specs=pl.BlockSpec((tR, tW), q_map),
        compiler_params=pltpu.CompilerParams(
            dimension_semantics=sem,
            vmem_limit_bytes=vmem_limit,
        ),
    )(q2, g_tiled)


def _gate_only(c2, w, b2):
    """Single-shot gate: sigmoid(c2 @ w + b2) in f32, row-blocked for large batch."""
    B, H_in = c2.shape
    H_out = w.shape[1]
    tB = B if B <= _MAX_ROW_BLOCK else _MAX_ROW_BLOCK
    return pl.pallas_call(
        _gate_only_kernel,
        out_shape=jax.ShapeDtypeStruct((B, H_out), jnp.float32),
        grid=(pl.cdiv(B, tB),),
        in_specs=[
            pl.BlockSpec((tB, H_in), lambda i: (i, 0)),
            pl.BlockSpec((H_in, H_out), lambda i: (0, 0)),
            pl.BlockSpec((1, H_out), lambda i: (0, 0)),
        ],
        out_specs=pl.BlockSpec((tB, H_out), lambda i: (i, 0)),
        compiler_params=pltpu.CompilerParams(dimension_semantics=("parallel",)),
    )(c2, w, b2)


@functools.partial(jax.jit, static_argnames=("only_gate", "tile_width"))
def sigmoid_gate(q, c, w, b, only_gate=False, tile_width=None):
    """q: (..., T, H_out), c: (..., H_in), w: (H_in, H_out), b: (H_out,)."""
    *lead, T, H_out = q.shape
    H_in = c.shape[-1]
    assert tuple(c.shape[:-1]) == tuple(lead), (q.shape, c.shape)
    assert w.shape == (H_in, H_out), (w.shape, H_in, H_out)
    assert b.shape == (H_out,), b.shape

    B = math.prod(lead)
    c2 = c.reshape(B, H_in)

    if only_gate:
        # Never touches q: one tiny single-shot Pallas kernel.
        g = _gate_only(c2, w, b.reshape(1, H_out))
        return g.astype(q.dtype).reshape(*lead, 1, H_out)

    # Gate = sigmoid(c @ w + b): ~B*H_out elements.  Plain jnp so XLA fuses it
    # (plus the tiny repeat/tile below) next to the single streaming pallas_call.
    g_f32 = jax.nn.sigmoid(
        jnp.dot(c2.astype(jnp.float32), w.astype(jnp.float32),
                preferred_element_type=jnp.float32)
        + b.astype(jnp.float32))
    g_q = g_f32.astype(q.dtype)                       # (B, H_out), returned gate

    # Sublane densification: (B, T*H_out) -> (B*k, (T//k)*H_out).
    k = _choose_row_repeat(B, T)
    R, row_width = B * k, (T // k) * H_out
    q2 = q.reshape(R, row_width)

    itemsize = jnp.dtype(q.dtype).itemsize
    budget, vmem_limit = _vmem_policy()
    tR = R if R <= _MAX_ROW_BLOCK else _MAX_ROW_BLOCK
    if tile_width is not None:
        assert tile_width % H_out == 0 and (
            tile_width % _LANE == 0 or tile_width >= row_width), tile_width
        tW = min(tile_width, row_width)
    else:
        tW = _choose_width_tile(row_width, H_out, tR, itemsize, budget)

    # Resident gate block in q.dtype (upcast in-kernel), tiled once to one block
    # width; using the q.dtype gate makes out == q * g_returned (fixes the
    # previous last-ulp mismatch for low-precision q).
    g_rows = jnp.repeat(g_q, k, axis=0)               # (R, H_out)
    g_tiled = jnp.tile(g_rows, (1, tW // H_out))      # (R, tW)
    # TODO(synk): for a huge flattened batch this materializes R*tW gate elements
    # in HBM; a fully in-kernel gate (pl.when at step 0 into a VMEM scratch)
    # would avoid that at the cost of in-kernel lane tiling.

    out = _apply_gate(q2, g_tiled, tR, tW, vmem_limit).reshape(q.shape)
    return out, g_q.reshape(*lead, 1, H_out)


# ---------------------------------------------------------------------------
# Reference + tests
# ---------------------------------------------------------------------------

def _reference(q, c, w, b):
    g = jax.nn.sigmoid(jnp.einsum("...h,ho->...o", c, w) + b)[..., None, :]
    return q * g, g


if __name__ == "__main__":
    # Shapes implied by the module: hidden_dim = out_dim = 32, seq T = 8, batch = 2.
    H, T, B = 32, 8, 2
    key = jax.random.PRNGKey(0)
    kq, kc, kw, kb, kq2, kc2 = jax.random.split(key, 6)

    q = jax.random.normal(kq, (B, T, H), dtype=jnp.float32)
    c = jax.random.normal(kc, (B, H), dtype=jnp.float32)
    lim = 1.0 / math.sqrt(H)          # init_linear-style uniform init, built in-script
    w = jax.random.uniform(kw, (H, H), minval=-lim, maxval=lim, dtype=jnp.float32)
    b = jax.random.uniform(kb, (H,), minval=-lim, maxval=lim, dtype=jnp.float32)

    out_ref, g_ref = _reference(q, c, w, b)

    # Default path: single fused streaming pallas_call.
    out, g = sigmoid_gate(q, c, w, b)
    jax.block_until_ready((out, g))
    assert out.shape == (B, T, H) and g.shape == (B, 1, H)
    assert jnp.allclose(out, out_ref, atol=1e-5, rtol=1e-5)
    assert jnp.allclose(g, g_ref, atol=1e-5, rtol=1e-5)

    # only_gate: Pallas gate kernel, q never streamed.
    g_only = sigmoid_gate(q, c, w, b, only_gate=True)
    jax.block_until_ready(g_only)
    assert g_only.shape == (B, 1, H)
    assert jnp.allclose(g_only, g_ref, atol=1e-5, rtol=1e-5)

    # Longer sequence with a forced 128-lane tile -> multi-step pipelined grid
    # (exercises the double-buffered streaming path with (8, 128) blocks).
    T2 = 64
    q_big = jax.random.normal(kq2, (B, T2, H), dtype=jnp.float32)
    out_big_ref, g_big_ref = _reference(q_big, c, w, b)
    out_big, g_big = sigmoid_gate(q_big, c, w, b, tile_width=128)
    jax.block_until_ready((out_big, g_big))
    assert jnp.allclose(out_big, out_big_ref, atol=1e-5, rtol=1e-5)
    assert jnp.allclose(g_big, g_big_ref, atol=1e-5, rtol=1e-5)

    # Extra leading batch dims, default tiling (rows densify to 8, width 128).
    q4 = jax.random.normal(kq2, (2, 2, T, H), dtype=jnp.float32)
    c4 = jax.random.normal(kc2, (2, 2, H), dtype=jnp.float32)
    out4_ref, g4_ref = _reference(q4, c4, w, b)
    out4, g4 = sigmoid_gate(q4, c4, w, b)
    jax.block_until_ready((out4, g4))
    assert out4.shape == (2, 2, T, H) and g4.shape == (2, 2, 1, H)
    assert jnp.allclose(out4, out4_ref, atol=1e-5, rtol=1e-5)
    assert jnp.allclose(g4, g4_ref, atol=1e-5, rtol=1e-5)

    print("KERNEL_OK")
</pallas_src>

<mosaic_0001>
module attributes {stable_mosaic.version = 11 : i64} {
  func.func @_apply_gate_kernel(%arg0: i32, %arg1: memref<8x64xf32, #tpu.memory_space<vmem>>, %arg2: memref<8x64xf32, #tpu.memory_space<vmem>>, %arg3: memref<8x64xf32, #tpu.memory_space<vmem>>) attributes {dimension_semantics = [#tpu.dimension_semantics<parallel>], iteration_bounds = array<i64: 1>, scalar_prefetch = 0 : i64, scratch_operands = 0 : i64, tpu.core_type = #tpu.core_type<tc>, window_params = [{transform_indices = @transform_0, window_bounds = array<i64: 8, 64>}, {pipeline_mode = #tpu.pipeline_mode<synchronous>, transform_indices = @transform_1, window_bounds = array<i64: 8, 64>}, {transform_indices = @transform_2, window_bounds = array<i64: 8, 64>}]} {
    %c0 = arith.constant 0 : index
    %c0_0 = arith.constant 0 : index
    %0 = vector.load %arg1[%c0, %c0_0] : memref<8x64xf32, #tpu.memory_space<vmem>>, vector<8x64xf32>
    %c0_1 = arith.constant 0 : index
    %c0_2 = arith.constant 0 : index
    %1 = vector.load %arg2[%c0_1, %c0_2] : memref<8x64xf32, #tpu.memory_space<vmem>>, vector<8x64xf32>
    %2 = arith.mulf %0, %1 : vector<8x64xf32>
    %c0_3 = arith.constant 0 : index
    %c0_4 = arith.constant 0 : index
    %3 = vector.load %arg3[%c0_3, %c0_4] : memref<8x64xf32, #tpu.memory_space<vmem>>, vector<8x64xf32>
    tpu.vector_store %arg3[%c0_3, %c0_4], %2 {strides = array<i32>} : memref<8x64xf32, #tpu.memory_space<vmem>>, vector<8x64xf32>,
    return
  }
  func.func @transform_0(%arg0: i32) -> (i32, i32) {
    %c0_i32 = arith.constant 0 : i32
    %c0_i32_0 = arith.constant 0 : i32
    return %c0_i32, %arg0 : i32, i32
  }
  func.func @transform_1(%arg0: i32) -> (i32, i32) {
    %c0_i32 = arith.constant 0 : i32
    %c0_i32_0 = arith.constant 0 : i32
    %c0_i32_1 = arith.constant 0 : i32
    return %c0_i32, %c0_i32_0 : i32, i32
  }
  func.func @transform_2(%arg0: i32) -> (i32, i32) {
    %c0_i32 = arith.constant 0 : i32
    %c0_i32_0 = arith.constant 0 : i32
    return %c0_i32, %arg0 : i32, i32
  }
}

</mosaic_0001>

<bundles_post_ra>
// kernel: tile.7
= control target key start
LH: loop header
LB: loop body
LE: loop exit
PB: predicated region body
PF: predicated region fallthrough
CT: control target
= control target key end

     0   :  { %vm42_vm0 = vcmask 1047556   ;;  %vm44_vm1 = vcmask 261120   ;;  %vm54_vm2 = vcmask 523520   ;;  %s111_s0 = inlined_call_operand.vmem [shape: f32[8,2,32], index: 0, kind: input, shape index: {}]   ;;  %s112_s1 = inlined_call_operand.vmem [shape: f32[8,64], index: 1, kind: output, shape index: {}]  }
   0x1   :  { %v62_v0 = vld [vmem:[%s111_s0 + $0xe] sm:$0x3]  ;;  %v63_v1 = vld [vmem:[%s111_s0 + $0xc] sm:$0x3]  ;;  %v64_v2 = vld [vmem:[%s111_s0 + $0xa] sm:$0x3] }
   0x2   :  { %8 = vst [vmem:[#allocation0 + $0x38] sm:$0x3] %v62_v0  ;;  %13 = vst [vmem:[#allocation0 + $0x30] sm:$0x3] %v63_v1  ;;  %v65_v3 = vld [vmem:[%s111_s0 + $0x8] sm:$0x3] }
   0x3   :  { %18 = vst [vmem:[#allocation0 + $0x28] sm:$0x3] %v64_v2  ;;  %v66_v4 = vld [vmem:[%s111_s0 + $0x6] sm:$0x3]  ;;  %v67_v5 = vld [vmem:[%s111_s0 + $0x4] sm:$0x3] }
   0x4   :  { %23 = vst [vmem:[#allocation0 + $0x20] sm:$0x3] %v65_v3  ;;  %28 = vst [vmem:[#allocation0 + $0x18] sm:$0x3] %v66_v4  ;;  %v68_v6 = vld [vmem:[%s111_s0 + $0x2] sm:$0x3] }
   0x5   :  { %33 = vst [vmem:[#allocation0 + $0x10] sm:$0x3] %v67_v5  ;;  %v38_v7 = vld [vmem:[%s111_s0] sm:$0x3]  ;;  %37 = vst [vmem:[#allocation0 + $0x8] sm:$0x3] %v68_v6 }
   0x6   :  { %39 = vst [vmem:[#allocation0] sm:$0x3] %v38_v7  ;;  %s70_s0 = smov 32  }
   0xb   :  { %v41_v8 = vld [vmem:[#allocation0] ss:$8 sm:$0xf0]   ;;  %v49_v9 = vld [vmem:[#allocation0 + $0x1] ss:$8 sm:$0xf0]  }
   0xd   :  { %v40_v10 = vld [vmem:[#allocation0] ss:$8 sm:$0xf]   ;;  %v47_v11 = vld [vmem:[#allocation0 + $0x1] ss:$8 sm:$0xf]  }
   0xe   :  { %v43_v12 = vsel %vm42_vm0, %v41_v8, %v40_v10  ;;  %v51_v13 = vsel %vm42_vm0, %v49_v9, %v47_v11 }
   0xf   :  { %52 = vrot.lane.b32.xlu0 %v51_v13, %s70_s0  ;;  %45 = vst.msk [vmem:[%s112_s1] sm:$0xff] %vm44_vm1, %v43_v12  }
  0x81   :  { %v53_v14 = vpop.permute.xlu0 %52  }
  0x82   :  { %55 = vst.msk [vmem:[%s112_s1] sm:$0xff] %vm54_vm2, %v53_v14  }

// kernel: sigmoid_gate.1
= control target key start
LH: loop header
LB: loop body
LE: loop exit
PB: predicated region body
PF: predicated region fallthrough
CT: control target
= control target key end

     0   :  { %vm14_vm0 = vcmask 523264   ;;  %s44_s0 = inlined_call_operand.vmem [shape: f32[8,64], index: 0, kind: input, shape index: {}]   ;;  %s45_s1 = inlined_call_operand.vmem [shape: f32[8,64], index: 1, kind: input, shape index: {}]   ;;  %s46_s2 = inlined_call_operand.vmem [shape: f32[8,64], index: 2, kind: output, shape index: {}]  }
   0x1   :  { %v11_v0 = vld [vmem:[%s44_s0] sm:$0xff] }
   0x2   :  { %v12_v1 = vld [vmem:[%s45_s1] sm:$0xff] }
   0x3   :  { %v13_v2 = vmul.f32 %v12_v1, %v11_v0 }
   0x5   :  { %15 = vst.msk [vmem:[%s46_s2] sm:$0xff] %vm14_vm0, %v13_v2 }

</bundles_post_ra>
